<compile_context>
chip_gen: v6e
topology: v6e:2x2x1
jax: 0.10.0
libtpu: 0.0.40
codegen_flags: <defaults>
</compile_context>

<pallas_src>
import functools
import numpy as np
import jax
import jax.numpy as jnp
from jax.experimental import pallas as pl
from jax.experimental.pallas import tpu as pltpu

# ---- constants implied by KaldiWaveFeature.__init__ defaults ----------------
NUM_MEL_BINS = 64
FRAME_LENGTH_MS = 25
FRAME_SHIFT_MS = 10
SAMPLERATE = 16000
PREEMPH = 0.97                      # kaldi default preemphasis_coefficient
LOW_FREQ = 20.0                     # kaldi default low_freq
HIGH_FREQ = 0.0                     # kaldi default -> Nyquist
EPS = float(np.finfo(np.float32).eps)

WINDOW_SIZE = FRAME_LENGTH_MS * SAMPLERATE // 1000    # 400 samples
WINDOW_SHIFT = FRAME_SHIFT_MS * SAMPLERATE // 1000    # 160 samples
PADDED_WINDOW = 1
while PADDED_WINDOW < WINDOW_SIZE:                    # round_to_power_of_two
    PADDED_WINDOW *= 2                                # 512
NUM_RFFT_BINS = PADDED_WINDOW // 2                    # 256 (Nyquist bin has zero mel weight)
MEL_PAD = 128                                         # lane-dense output width

# dither noise and raw log-energy are skipped — dither=0.0 in the module and
# use_energy defaults to False in kaldi.fbank, so both are no-ops.


def _mel_scale(freq):
    return 1127.0 * np.log(1.0 + freq / 700.0)


def _build_constants():
    """Deterministic, parameter-free constants (built in float64, cast f32)."""
    n = np.arange(WINDOW_SIZE, dtype=np.float64)
    # Povey window = hann(periodic=False) ** 0.85
    hann = 0.5 - 0.5 * np.cos(2.0 * np.pi * n / (WINDOW_SIZE - 1))
    window = hann ** 0.85

    # Linear pre-processing folded into one matrix L = W @ P @ D:
    #   D: remove_dc_offset (subtract per-frame mean)
    #   P: pre-emphasis x[n] - 0.97*x[n-1] with replicate pad of x[-1]
    #   W: Povey window
    D = np.eye(WINDOW_SIZE) - np.full((WINDOW_SIZE, WINDOW_SIZE),
                                      1.0 / WINDOW_SIZE)
    P = np.eye(WINDOW_SIZE)
    P[0, 0] = 1.0 - PREEMPH
    P[np.arange(1, WINDOW_SIZE), np.arange(WINDOW_SIZE - 1)] = -PREEMPH
    L = window[:, None] * (P @ D)                                # (400, 400)

    # Real DFT over the unpadded 400 samples (zero-padding to 512 contributes
    # nothing).  Only bins 0..255 — the dropped Nyquist bin has zero mel weight.
    k = np.arange(NUM_RFFT_BINS, dtype=np.float64)
    ang = 2.0 * np.pi * np.outer(n, k) / PADDED_WINDOW           # (400, 256)
    dft = np.concatenate([np.cos(ang), np.sin(ang)], axis=1)     # (400, 512)
    combined = (L.T @ dft).astype(np.float32)                    # (400, 512)

    # Mel filterbank, identical to torchaudio.compliance.kaldi.get_mel_banks
    high_freq = HIGH_FREQ if HIGH_FREQ > 0.0 else HIGH_FREQ + 0.5 * SAMPLERATE
    fft_bin_width = SAMPLERATE / PADDED_WINDOW
    mel_low = _mel_scale(LOW_FREQ)
    mel_high = _mel_scale(high_freq)
    mel_delta = (mel_high - mel_low) / (NUM_MEL_BINS + 1)
    b = np.arange(NUM_MEL_BINS, dtype=np.float64)[:, None]
    left = mel_low + b * mel_delta
    center = left + mel_delta
    right = left + 2.0 * mel_delta
    mel = _mel_scale(fft_bin_width * np.arange(NUM_RFFT_BINS,
                                               dtype=np.float64))[None, :]
    up = (mel - left) / (center - left)
    down = (right - mel) / (right - center)
    banks = np.maximum(0.0, np.minimum(up, down))                # (64, 256)
    mel_t = np.zeros((NUM_RFFT_BINS, MEL_PAD), dtype=np.float32)
    mel_t[:, :NUM_MEL_BINS] = banks.T                            # (256, 128)
    return combined, mel_t


# ------------------------------- Pallas kernel --------------------------------
def _fbank_kernel(frames_ref, dft_ref, mel_ref, out_ref):
    # (tm, 400) @ (400, 512): pre-processing + real-DFT fused in one matmul.
    y = jnp.dot(frames_ref[...], dft_ref[...],
                preferred_element_type=jnp.float32)              # (tm, 512)
    re = y[:, :NUM_RFFT_BINS]                                    # lane-aligned slices
    im = y[:, NUM_RFFT_BINS:]
    power = re * re + im * im                                    # (tm, 256)
    # mel filterbank (zero-padded to 128 lanes) + log
    mel = jnp.dot(power, mel_ref[...],
                  preferred_element_type=jnp.float32)            # (tm, 128)
    out_ref[...] = jnp.log(jnp.maximum(mel, EPS))


@functools.partial(jax.jit, static_argnames=("max_tm",))
def kaldi_fbank(pcm, combined, mel_t, *, max_tm=256):
    wave = pcm[0].astype(jnp.float32)                 # kaldi uses channel 0
    num_samples = wave.shape[0]
    # snip_edges=True framing
    m = 1 + (num_samples - WINDOW_SIZE) // WINDOW_SHIFT
    idx = (jnp.arange(m)[:, None] * WINDOW_SHIFT
           + jnp.arange(WINDOW_SIZE)[None, :])
    frames = wave[idx]                                # (m, 400)

    tm = min(max_tm, ((m + 7) // 8) * 8)              # multiple of 8 sublanes
    m_pad = pl.cdiv(m, tm) * tm
    frames = jnp.pad(frames, ((0, m_pad - m), (0, 0)))

    out = pl.pallas_call(
        _fbank_kernel,
        out_shape=jax.ShapeDtypeStruct((m_pad, MEL_PAD), jnp.float32),
        grid=(m_pad // tm,),
        in_specs=[
            pl.BlockSpec((tm, WINDOW_SIZE), lambda i: (i, 0)),
            pl.BlockSpec((WINDOW_SIZE, 2 * NUM_RFFT_BINS), lambda i: (0, 0)),
            pl.BlockSpec((NUM_RFFT_BINS, MEL_PAD), lambda i: (0, 0)),
        ],
        out_specs=pl.BlockSpec((tm, MEL_PAD), lambda i: (i, 0)),
        compiler_params=pltpu.CompilerParams(
            dimension_semantics=("parallel",)),
    )(frames, combined, mel_t)
    return out[:m, :NUM_MEL_BINS]


if __name__ == "__main__":
    key = jax.random.PRNGKey(0)
    num_samples = WINDOW_SIZE + 7 * WINDOW_SHIFT      # 1520 samples -> 8 frames
    pcm = jax.random.normal(key, (1, num_samples), dtype=jnp.float32)

    combined, mel_t = _build_constants()
    feats = kaldi_fbank(pcm, jnp.asarray(combined), jnp.asarray(mel_t))
    feats = jax.block_until_ready(feats)

    assert feats.shape == (8, NUM_MEL_BINS), feats.shape
    assert feats.dtype == jnp.float32
    assert bool(jnp.all(jnp.isfinite(feats)))
    print("KERNEL_OK")
</pallas_src>

<mosaic_0001>
module attributes {stable_mosaic.version = 11 : i64} {
  func.func @_fbank_kernel(%arg0: i32, %arg1: memref<8x400xf32, #tpu.memory_space<vmem>>, %arg2: memref<400x512xf32, #tpu.memory_space<vmem>>, %arg3: memref<256x128xf32, #tpu.memory_space<vmem>>, %arg4: memref<8x128xf32, #tpu.memory_space<vmem>>) attributes {dimension_semantics = [#tpu.dimension_semantics<parallel>], iteration_bounds = array<i64: 1>, scalar_prefetch = 0 : i64, scratch_operands = 0 : i64, tpu.core_type = #tpu.core_type<tc>, window_params = [{transform_indices = @transform_0, window_bounds = array<i64: 8, 400>}, {pipeline_mode = #tpu.pipeline_mode<synchronous>, transform_indices = @transform_1, window_bounds = array<i64: 400, 512>}, {pipeline_mode = #tpu.pipeline_mode<synchronous>, transform_indices = @transform_2, window_bounds = array<i64: 256, 128>}, {transform_indices = @transform_3, window_bounds = array<i64: 8, 128>}]} {
    %c0 = arith.constant 0 : index
    %c0_0 = arith.constant 0 : index
    %0 = vector.load %arg1[%c0, %c0_0] : memref<8x400xf32, #tpu.memory_space<vmem>>, vector<8x400xf32>
    %c0_1 = arith.constant 0 : index
    %c0_2 = arith.constant 0 : index
    %1 = vector.load %arg2[%c0_1, %c0_2] : memref<400x512xf32, #tpu.memory_space<vmem>>, vector<400x512xf32>
    %cst = arith.constant dense<0.000000e+00> : vector<8x512xf32>
    %2 = tpu.matmul %0, %1, %cst {dimension_numbers = #tpu.dot_dimension_numbers<[1], [0], [0], [1], [0, 0, 1, 1], [], []>} : vector<8x400xf32>, vector<400x512xf32>, vector<8x512xf32> -> vector<8x512xf32>
    %3 = vector.extract_strided_slice %2 {offsets = [0, 0], sizes = [8, 256], strides = [1, 1]} : vector<8x512xf32> to vector<8x256xf32>
    %4 = vector.extract_strided_slice %2 {offsets = [0, 256], sizes = [8, 256], strides = [1, 1]} : vector<8x512xf32> to vector<8x256xf32>
    %5 = arith.mulf %3, %3 : vector<8x256xf32>
    %6 = arith.mulf %4, %4 : vector<8x256xf32>
    %7 = arith.addf %5, %6 : vector<8x256xf32>
    %c0_3 = arith.constant 0 : index
    %c0_4 = arith.constant 0 : index
    %8 = vector.load %arg3[%c0_3, %c0_4] : memref<256x128xf32, #tpu.memory_space<vmem>>, vector<256x128xf32>
    %cst_5 = arith.constant dense<0.000000e+00> : vector<8x128xf32>
    %9 = tpu.matmul %7, %8, %cst_5 {dimension_numbers = #tpu.dot_dimension_numbers<[1], [0], [0], [1], [0, 0, 1, 1], [], []>} : vector<8x256xf32>, vector<256x128xf32>, vector<8x128xf32> -> vector<8x128xf32>
    %cst_6 = arith.constant 1.1920929E-7 : f32
    %10 = vector.broadcast %cst_6 : f32 to vector<8x128xf32>
    %11 = arith.maximumf %9, %10 : vector<8x128xf32>
    %12 = math.log %11 : vector<8x128xf32>
    %c0_7 = arith.constant 0 : index
    %c0_8 = arith.constant 0 : index
    %13 = vector.load %arg4[%c0_7, %c0_8] : memref<8x128xf32, #tpu.memory_space<vmem>>, vector<8x128xf32>
    tpu.vector_store %arg4[%c0_7, %c0_8], %12 {strides = array<i32>} : memref<8x128xf32, #tpu.memory_space<vmem>>, vector<8x128xf32>,
    return
  }
  func.func @transform_0(%arg0: i32) -> (i32, i32) {
    %c0_i32 = arith.constant 0 : i32
    %c0_i32_0 = arith.constant 0 : i32
    return %arg0, %c0_i32 : i32, i32
  }
  func.func @transform_1(%arg0: i32) -> (i32, i32) {
    %c0_i32 = arith.constant 0 : i32
    %c0_i32_0 = arith.constant 0 : i32
    %c0_i32_1 = arith.constant 0 : i32
    return %c0_i32, %c0_i32_0 : i32, i32
  }
  func.func @transform_2(%arg0: i32) -> (i32, i32) {
    %c0_i32 = arith.constant 0 : i32
    %c0_i32_0 = arith.constant 0 : i32
    %c0_i32_1 = arith.constant 0 : i32
    return %c0_i32, %c0_i32_0 : i32, i32
  }
  func.func @transform_3(%arg0: i32) -> (i32, i32) {
    %c0_i32 = arith.constant 0 : i32
    %c0_i32_0 = arith.constant 0 : i32
    return %arg0, %c0_i32 : i32, i32
  }
}

</mosaic_0001>

<bundles_post_ra>
// kernel: kaldi_fbank.1
= control target key start
LH: loop header
LB: loop body
LE: loop exit
PB: predicated region body
PF: predicated region fallthrough
CT: control target
= control target key end

     0   :  { %vm219_vm0 = vcmask 130048   ;;  %s1445_s0 = inlined_call_operand.vmem [shape: f32[8,400], index: 0, kind: input, shape index: {}]   ;;  %s1446_s1 = inlined_call_operand.vmem [shape: f32[400,512], index: 1, kind: input, shape index: {}]   ;;  %s1447_s2 = inlined_call_operand.vmem [shape: f32[256,128], index: 2, kind: input, shape index: {}]   ;;  %s1448_s3 = inlined_call_operand.hbm [shape: f32[8,128], index: 3, kind: output, shape index: {}]  }
   0x1   :  { %v80_v0 = vld [vmem:[%s1446_s1 + $0x1e8] sm:$0xff]  ;;  %v79_v2 = vld [vmem:[%s1446_s1 + $0x1e0] sm:$0xff] }
   0x2   :  { %v208_v1 = vld [vmem:[%s1446_s1 + $0x5e8] sm:$0xff]  ;;  %223 = vmatprep.subr.mxu0 %v80_v0  ;;  %v207_v3 = vld [vmem:[%s1446_s1 + $0x5e0] sm:$0xff] }
   0x3   :  { %294 = vmatprep.subr.mxu1 %v208_v1  ;;  %v76_v4 = vld [vmem:[%s1446_s1 + $0x1c8] sm:$0xff]  ;;  %224 = vmatpush1.msra.mxu0 %v79_v2  ;;  %v75_v6 = vld [vmem:[%s1446_s1 + $0x1c0] sm:$0xff] }
   0x4   :  { %v204_v5 = vld [vmem:[%s1446_s1 + $0x5c8] sm:$0xff]  ;;  %295 = vmatpush1.msra.mxu1 %v207_v3  ;;  %v203_v7 = vld [vmem:[%s1446_s1 + $0x5c0] sm:$0xff]  ;;  %225 = vmatprep.subr.mxu0 %v76_v4 }
   0x5   :  { %v72_v8 = vld [vmem:[%s1446_s1 + $0x1a8] sm:$0xff]  ;;  %296 = vmatprep.subr.mxu1 %v204_v5  ;;  %v71_v10 = vld [vmem:[%s1446_s1 + $0x1a0] sm:$0xff]  ;;  %226 = vmatpush1.msra.mxu0 %v75_v6 }
   0x6   :  { %v200_v9 = vld [vmem:[%s1446_s1 + $0x5a8] sm:$0xff]  ;;  %v199_v11 = vld [vmem:[%s1446_s1 + $0x5a0] sm:$0xff]  ;;  %297 = vmatpush1.msra.mxu1 %v203_v7  ;;  %227 = vmatprep.subr.mxu0 %v72_v8  ;;  %v935_v8 = vld [vmem:[%s1445_s0 + $0x18] sm:$0xff] }
   0x7   :  { %v68_v12 = vld [vmem:[%s1446_s1 + $0x188] sm:$0xff]  ;;  %298 = vmatprep.subr.mxu1 %v200_v9  ;;  %v67_v14 = vld [vmem:[%s1446_s1 + $0x180] sm:$0xff]  ;;  %228 = vmatpush1.msra.mxu0 %v71_v10  ;;  %v943_v10 = vld [vmem:[%s1445_s0 + $0x10] sm:$0xff] }
   0x8   :  { %v196_v13 = vld [vmem:[%s1446_s1 + $0x588] sm:$0xff]  ;;  %v195_v15 = vld [vmem:[%s1446_s1 + $0x580] sm:$0xff]  ;;  %299 = vmatpush1.msra.mxu1 %v199_v11  ;;  %229 = vmatprep.subr.mxu0 %v68_v12  ;;  %v82_v11 = vld [vmem:[%s1446_s1 + $0x1f8] sm:$0xff] }
   0x9   :  { %v64_v16 = vld [vmem:[%s1446_s1 + $0x168] sm:$0xff]  ;;  %300 = vmatprep.subr.mxu1 %v196_v13  ;;  %v63_v18 = vld [vmem:[%s1446_s1 + $0x160] sm:$0xff]  ;;  %230 = vmatpush1.msra.mxu0 %v67_v14  ;;  %v81_v13 = vld [vmem:[%s1446_s1 + $0x1f0] sm:$0xff] }
   0xa   :  { %v192_v17 = vld [vmem:[%s1446_s1 + $0x568] sm:$0xff]  ;;  %v191_v19 = vld [vmem:[%s1446_s1 + $0x560] sm:$0xff]  ;;  %301 = vmatpush1.msra.mxu1 %v195_v15  ;;  %231 = vmatprep.subr.mxu0 %v64_v16  ;;  %v78_v15 = vld [vmem:[%s1446_s1 + $0x1d8] sm:$0xff] }
   0xb   :  { %v60_v20 = vld [vmem:[%s1446_s1 + $0x148] sm:$0xff]  ;;  %302 = vmatprep.subr.mxu1 %v192_v17  ;;  %v59_v22 = vld [vmem:[%s1446_s1 + $0x140] sm:$0xff]  ;;  %232 = vmatpush1.msra.mxu0 %v63_v18  ;;  %v77_v17 = vld [vmem:[%s1446_s1 + $0x1d0] sm:$0xff] }
   0xc   :  { %v188_v21 = vld [vmem:[%s1446_s1 + $0x548] sm:$0xff]  ;;  %v187_v23 = vld [vmem:[%s1446_s1 + $0x540] sm:$0xff]  ;;  %303 = vmatpush1.msra.mxu1 %v191_v19  ;;  %233 = vmatprep.subr.mxu0 %v60_v20  ;;  %v74_v19 = vld [vmem:[%s1446_s1 + $0x1b8] sm:$0xff] }
   0xd   :  { %v56_v24 = vld [vmem:[%s1446_s1 + $0x128] sm:$0xff]  ;;  %304 = vmatprep.subr.mxu1 %v188_v21  ;;  %v55_v26 = vld [vmem:[%s1446_s1 + $0x120] sm:$0xff]  ;;  %234 = vmatpush1.msra.mxu0 %v59_v22  ;;  %v73_v21 = vld [vmem:[%s1446_s1 + $0x1b0] sm:$0xff] }
   0xe   :  { %v184_v25 = vld [vmem:[%s1446_s1 + $0x528] sm:$0xff]  ;;  %v183_v27 = vld [vmem:[%s1446_s1 + $0x520] sm:$0xff]  ;;  %305 = vmatpush1.msra.mxu1 %v187_v23  ;;  %235 = vmatprep.subr.mxu0 %v56_v24  ;;  %v70_v23 = vld [vmem:[%s1446_s1 + $0x198] sm:$0xff] }
   0xf   :  { %v52_v28 = vld [vmem:[%s1446_s1 + $0x108] sm:$0xff]  ;;  %306 = vmatprep.subr.mxu1 %v184_v25  ;;  %v51_v30 = vld [vmem:[%s1446_s1 + $0x100] sm:$0xff]  ;;  %236 = vmatpush1.msra.mxu0 %v55_v26  ;;  %v69_v25 = vld [vmem:[%s1446_s1 + $0x190] sm:$0xff] }
  0x10   :  { %v180_v29 = vld [vmem:[%s1446_s1 + $0x508] sm:$0xff]  ;;  %v179_v31 = vld [vmem:[%s1446_s1 + $0x500] sm:$0xff]  ;;  %307 = vmatpush1.msra.mxu1 %v183_v27  ;;  %237 = vmatprep.subr.mxu0 %v52_v28  ;;  %v66_v27 = vld [vmem:[%s1446_s1 + $0x178] sm:$0xff] }
  0x11   :  { %v48_v32 = vld [vmem:[%s1446_s1 + $0xe8] sm:$0xff]  ;;  %308 = vmatprep.subr.mxu1 %v180_v29  ;;  %v47_v34 = vld [vmem:[%s1446_s1 + $0xe0] sm:$0xff]  ;;  %238 = vmatpush1.msra.mxu0 %v51_v30  ;;  %v65_v29 = vld [vmem:[%s1446_s1 + $0x170] sm:$0xff] }
  0x12   :  { %v176_v33 = vld [vmem:[%s1446_s1 + $0x4e8] sm:$0xff]  ;;  %v175_v35 = vld [vmem:[%s1446_s1 + $0x4e0] sm:$0xff]  ;;  %309 = vmatpush1.msra.mxu1 %v179_v31  ;;  %239 = vmatprep.subr.mxu0 %v48_v32  ;;  %v62_v31 = vld [vmem:[%s1446_s1 + $0x158] sm:$0xff] }
  0x13   :  { %v44_v36 = vld [vmem:[%s1446_s1 + $0xc8] sm:$0xff]  ;;  %310 = vmatprep.subr.mxu1 %v176_v33  ;;  %v43_v38 = vld [vmem:[%s1446_s1 + $0xc0] sm:$0xff]  ;;  %240 = vmatpush1.msra.mxu0 %v47_v34  ;;  %v61_v33 = vld [vmem:[%s1446_s1 + $0x150] sm:$0xff] }
  0x14   :  { %v172_v37 = vld [vmem:[%s1446_s1 + $0x4c8] sm:$0xff]  ;;  %v171_v39 = vld [vmem:[%s1446_s1 + $0x4c0] sm:$0xff]  ;;  %311 = vmatpush1.msra.mxu1 %v175_v35  ;;  %241 = vmatprep.subr.mxu0 %v44_v36  ;;  %v58_v35 = vld [vmem:[%s1446_s1 + $0x138] sm:$0xff] }
  0x15   :  { %v40_v40 = vld [vmem:[%s1446_s1 + $0xa8] sm:$0xff]  ;;  %312 = vmatprep.subr.mxu1 %v172_v37  ;;  %v39_v42 = vld [vmem:[%s1446_s1 + $0xa0] sm:$0xff]  ;;  %242 = vmatpush1.msra.mxu0 %v43_v38  ;;  %v57_v37 = vld [vmem:[%s1446_s1 + $0x130] sm:$0xff] }
  0x16   :  { %v168_v41 = vld [vmem:[%s1446_s1 + $0x4a8] sm:$0xff]  ;;  %v167_v43 = vld [vmem:[%s1446_s1 + $0x4a0] sm:$0xff]  ;;  %313 = vmatpush1.msra.mxu1 %v171_v39  ;;  %243 = vmatprep.subr.mxu0 %v40_v40  ;;  %v54_v39 = vld [vmem:[%s1446_s1 + $0x118] sm:$0xff] }
  0x17   :  { %v36_v44 = vld [vmem:[%s1446_s1 + $0x88] sm:$0xff]  ;;  %314 = vmatprep.subr.mxu1 %v168_v41  ;;  %v35_v46 = vld [vmem:[%s1446_s1 + $0x80] sm:$0xff]  ;;  %244 = vmatpush1.msra.mxu0 %v39_v42  ;;  %v53_v41 = vld [vmem:[%s1446_s1 + $0x110] sm:$0xff] }
  0x18   :  { %v164_v45 = vld [vmem:[%s1446_s1 + $0x488] sm:$0xff]  ;;  %v163_v47 = vld [vmem:[%s1446_s1 + $0x480] sm:$0xff]  ;;  %315 = vmatpush1.msra.mxu1 %v167_v43  ;;  %245 = vmatprep.subr.mxu0 %v36_v44  ;;  %v50_v43 = vld [vmem:[%s1446_s1 + $0xf8] sm:$0xff] }
  0x19   :  { %v32_v48 = vld [vmem:[%s1446_s1 + $0x68] sm:$0xff]  ;;  %316 = vmatprep.subr.mxu1 %v164_v45  ;;  %v31_v50 = vld [vmem:[%s1446_s1 + $0x60] sm:$0xff]  ;;  %246 = vmatpush1.msra.mxu0 %v35_v46  ;;  %v49_v45 = vld [vmem:[%s1446_s1 + $0xf0] sm:$0xff] }
  0x1a   :  { %v160_v49 = vld [vmem:[%s1446_s1 + $0x468] sm:$0xff]  ;;  %v159_v51 = vld [vmem:[%s1446_s1 + $0x460] sm:$0xff]  ;;  %317 = vmatpush1.msra.mxu1 %v163_v47  ;;  %247 = vmatprep.subr.mxu0 %v32_v48  ;;  %v46_v47 = vld [vmem:[%s1446_s1 + $0xd8] sm:$0xff] }
  0x1b   :  { %v28_v52 = vld [vmem:[%s1446_s1 + $0x48] sm:$0xff]  ;;  %318 = vmatprep.subr.mxu1 %v160_v49  ;;  %v27_v54 = vld [vmem:[%s1446_s1 + $0x40] sm:$0xff]  ;;  %248 = vmatpush1.msra.mxu0 %v31_v50  ;;  %v45_v49 = vld [vmem:[%s1446_s1 + $0xd0] sm:$0xff] }
  0x1c   :  { %v156_v53 = vld [vmem:[%s1446_s1 + $0x448] sm:$0xff]  ;;  %v155_v55 = vld [vmem:[%s1446_s1 + $0x440] sm:$0xff]  ;;  %319 = vmatpush1.msra.mxu1 %v159_v51  ;;  %249 = vmatprep.subr.mxu0 %v28_v52  ;;  %v42_v51 = vld [vmem:[%s1446_s1 + $0xb8] sm:$0xff] }
  0x1d   :  { %v24_v56 = vld [vmem:[%s1446_s1 + $0x28] sm:$0xff]  ;;  %320 = vmatprep.subr.mxu1 %v156_v53  ;;  %v23_v58 = vld [vmem:[%s1446_s1 + $0x20] sm:$0xff]  ;;  %250 = vmatpush1.msra.mxu0 %v27_v54  ;;  %v41_v53 = vld [vmem:[%s1446_s1 + $0xb0] sm:$0xff] }
  0x1e   :  { %v152_v57 = vld [vmem:[%s1446_s1 + $0x428] sm:$0xff]  ;;  %v151_v59 = vld [vmem:[%s1446_s1 + $0x420] sm:$0xff]  ;;  %321 = vmatpush1.msra.mxu1 %v155_v55  ;;  %251 = vmatprep.subr.mxu0 %v24_v56  ;;  %v38_v55 = vld [vmem:[%s1446_s1 + $0x98] sm:$0xff] }
  0x1f   :  { %v20_v60 = vld [vmem:[%s1446_s1 + $0x8] sm:$0xff]  ;;  %322 = vmatprep.subr.mxu1 %v152_v57  ;;  %v19_v62 = vld [vmem:[%s1446_s1] sm:$0xff]  ;;  %252 = vmatpush1.msra.mxu0 %v23_v58  ;;  %v37_v57 = vld [vmem:[%s1446_s1 + $0x90] sm:$0xff] }
  0x20   :  { %v148_v61 = vld [vmem:[%s1446_s1 + $0x408] sm:$0xff]  ;;  %v147_v63 = vld [vmem:[%s1446_s1 + $0x400] sm:$0xff]  ;;  %323 = vmatpush1.msra.mxu1 %v151_v59  ;;  %253 = vmatprep.subr.mxu0 %v20_v60  ;;  %v34_v59 = vld [vmem:[%s1446_s1 + $0x78] sm:$0xff] }
  0x21   :  { %v144_v0 = vld [vmem:[%s1446_s1 + $0x3e8] sm:$0xff]  ;;  %324 = vmatprep.subr.mxu1 %v148_v61  ;;  %v143_v2 = vld [vmem:[%s1446_s1 + $0x3e0] sm:$0xff]  ;;  %254 = vmatpush1.msra.mxu0 %v19_v62  ;;  %v33_v61 = vld [vmem:[%s1446_s1 + $0x70] sm:$0xff] }
  0x22   :  { %v216_v1 = vld [vmem:[%s1446_s1 + $0x628] sm:$0xff]  ;;  %v215_v3 = vld [vmem:[%s1446_s1 + $0x620] sm:$0xff]  ;;  %325 = vmatpush1.msra.mxu1 %v147_v63  ;;  %255 = vmatprep.subr.mxu0 %v144_v0  ;;  %v30_v63 = vld [vmem:[%s1446_s1 + $0x58] sm:$0xff] }
  0x23   :  { %v140_v4 = vld [vmem:[%s1446_s1 + $0x3c8] sm:$0xff]  ;;  %354 = vmatprep.subr.mxu1 %v216_v1  ;;  %v139_v6 = vld [vmem:[%s1446_s1 + $0x3c0] sm:$0xff]  ;;  %256 = vmatpush2.msra.mxu0 %v143_v2  ;;  %v29_v2 = vld [vmem:[%s1446_s1 + $0x50] sm:$0xff] }
  0x24   :  { %v212_v5 = vld [vmem:[%s1446_s1 + $0x608] sm:$0xff]  ;;  %v211_v7 = vld [vmem:[%s1446_s1 + $0x600] sm:$0xff]  ;;  %355 = vmatpush2.msra.mxu1 %v215_v3  ;;  %257 = vmatprep.subr.mxu0 %v140_v4  ;;  %v26_v4 = vld [vmem:[%s1446_s1 + $0x38] sm:$0xff] }
  0x25   :  { %v136_v9 = vld [vmem:[%s1446_s1 + $0x3a8] sm:$0xff]  ;;  %356 = vmatprep.subr.mxu1 %v212_v5  ;;  %258 = vmatpush2.msra.mxu0 %v139_v6  ;;  %v135_v12 = vld [vmem:[%s1446_s1 + $0x3a0] sm:$0xff]  ;;  %v210_v5 = vld [vmem:[%s1446_s1 + $0x5f8] sm:$0xff] }
  0x26   :  { %357 = vmatpush2.msra.mxu1 %v211_v7  ;;  %633 = vmatprep.mubr.msk.f32.mxu1 %vm219_vm0, %v935_v8  ;;  %v132_v14 = vld [vmem:[%s1446_s1 + $0x388] sm:$0xff]  ;;  %v131_v16 = vld [vmem:[%s1446_s1 + $0x380] sm:$0xff]  ;;  %v25_v6 = vld [vmem:[%s1446_s1 + $0x30] sm:$0xff] }
  0x27   :  { %259 = vmatprep.subr.mxu0 %v136_v9  ;;  %359 = vmatmul.mubr.f32.vlgmr.msra.gmra.mxu1 %v943_v10  ;;  %v128_v18 = vld [vmem:[%s1446_s1 + $0x368] sm:$0xff]  ;;  %v127_v20 = vld [vmem:[%s1446_s1 + $0x360] sm:$0xff]  ;;  %v209_v7 = vld [vmem:[%s1446_s1 + $0x5f0] sm:$0xff] }
  0x28   :  { %365 = vmatprep.subr.mxu1 %v82_v11  ;;  %260 = vmatpush2.msra.mxu0 %v135_v12  ;;  %v124_v22 = vld [vmem:[%s1446_s1 + $0x348] sm:$0xff]  ;;  %v123_v24 = vld [vmem:[%s1446_s1 + $0x340] sm:$0xff]  ;;  %v22_v9 = vld [vmem:[%s1446_s1 + $0x18] sm:$0xff] }
  0x29   :  { %366 = vmatpush1.msra.mxu1 %v81_v13  ;;  %261 = vmatprep.subr.mxu0 %v132_v14  ;;  %v120_v26 = vld [vmem:[%s1446_s1 + $0x328] sm:$0xff]  ;;  %v119_v28 = vld [vmem:[%s1446_s1 + $0x320] sm:$0xff]  ;;  %v206_v11 = vld [vmem:[%s1446_s1 + $0x5d8] sm:$0xff] }
  0x2a   :  { %367 = vmatprep.subr.mxu1 %v78_v15  ;;  %262 = vmatpush2.msra.mxu0 %v131_v16  ;;  %v116_v30 = vld [vmem:[%s1446_s1 + $0x308] sm:$0xff]  ;;  %v115_v32 = vld [vmem:[%s1446_s1 + $0x300] sm:$0xff]  ;;  %v21_v12 = vld [vmem:[%s1446_s1 + $0x10] sm:$0xff] }
  0x2b   :  { %368 = vmatpush1.msra.mxu1 %v77_v17  ;;  %263 = vmatprep.subr.mxu0 %v128_v18  ;;  %v112_v34 = vld [vmem:[%s1446_s1 + $0x2e8] sm:$0xff]  ;;  %v111_v36 = vld [vmem:[%s1446_s1 + $0x2e0] sm:$0xff]  ;;  %v205_v13 = vld [vmem:[%s1446_s1 + $0x5d0] sm:$0xff] }
  0x2c   :  { %369 = vmatprep.subr.mxu1 %v74_v19  ;;  %264 = vmatpush2.msra.mxu0 %v127_v20  ;;  %v108_v38 = vld [vmem:[%s1446_s1 + $0x2c8] sm:$0xff]  ;;  %v107_v40 = vld [vmem:[%s1446_s1 + $0x2c0] sm:$0xff]  ;;  %v146_v14 = vld [vmem:[%s1446_s1 + $0x3f8] sm:$0xff] }
  0x2d   :  { %370 = vmatpush1.msra.mxu1 %v73_v21  ;;  %265 = vmatprep.subr.mxu0 %v124_v22  ;;  %v104_v42 = vld [vmem:[%s1446_s1 + $0x2a8] sm:$0xff]  ;;  %v103_v44 = vld [vmem:[%s1446_s1 + $0x2a0] sm:$0xff]  ;;  %v202_v15 = vld [vmem:[%s1446_s1 + $0x5b8] sm:$0xff] }
  0x2e   :  { %371 = vmatprep.subr.mxu1 %v70_v23  ;;  %266 = vmatpush2.msra.mxu0 %v123_v24  ;;  %v100_v46 = vld [vmem:[%s1446_s1 + $0x288] sm:$0xff]  ;;  %v99_v48 = vld [vmem:[%s1446_s1 + $0x280] sm:$0xff] }
  0x2f   :  { %372 = vmatpush1.msra.mxu1 %v69_v25  ;;  %267 = vmatprep.subr.mxu0 %v120_v26  ;;  %v96_v50 = vld [vmem:[%s1446_s1 + $0x268] sm:$0xff]  ;;  %v95_v52 = vld [vmem:[%s1446_s1 + $0x260] sm:$0xff] }
  0x30   :  { %373 = vmatprep.subr.mxu1 %v66_v27  ;;  %268 = vmatpush2.msra.mxu0 %v119_v28  ;;  %v92_v54 = vld [vmem:[%s1446_s1 + $0x248] sm:$0xff]  ;;  %v91_v56 = vld [vmem:[%s1446_s1 + $0x240] sm:$0xff] }
  0x31   :  { %374 = vmatpush1.msra.mxu1 %v65_v29  ;;  %269 = vmatprep.subr.mxu0 %v116_v30  ;;  %v88_v58 = vld [vmem:[%s1446_s1 + $0x228] sm:$0xff]  ;;  %v87_v60 = vld [vmem:[%s1446_s1 + $0x220] sm:$0xff] }
  0x32   :  { %375 = vmatprep.subr.mxu1 %v62_v31  ;;  %270 = vmatpush2.msra.mxu0 %v115_v32  ;;  %v84_v62 = vld [vmem:[%s1446_s1 + $0x208] sm:$0xff]  ;;  %v83_v0 = vld [vmem:[%s1446_s1 + $0x200] sm:$0xff] }
  0x33   :  { %376 = vmatpush1.msra.mxu1 %v61_v33  ;;  %271 = vmatprep.subr.mxu0 %v112_v34  ;;  %v1113_v1 = vld [vmem:[%s1445_s0 + $0x8] sm:$0xff]  ;;  %v1121_v3 = vld [vmem:[%s1445_s0] sm:$0xff] }
  0x34   :  { %377 = vmatprep.subr.mxu1 %v58_v35  ;;  %272 = vmatpush2.msra.mxu0 %v111_v36 }
  0x35   :  { %378 = vmatpush1.msra.mxu1 %v57_v37  ;;  %273 = vmatprep.subr.mxu0 %v108_v38 }
  0x36   :  { %379 = vmatprep.subr.mxu1 %v54_v39  ;;  %274 = vmatpush2.msra.mxu0 %v107_v40 }
  0x37   :  { %380 = vmatpush1.msra.mxu1 %v53_v41  ;;  %275 = vmatprep.subr.mxu0 %v104_v42 }
  0x38   :  { %381 = vmatprep.subr.mxu1 %v50_v43  ;;  %276 = vmatpush2.msra.mxu0 %v103_v44 }
  0x39   :  { %382 = vmatpush1.msra.mxu1 %v49_v45  ;;  %277 = vmatprep.subr.mxu0 %v100_v46 }
  0x3a   :  { %383 = vmatprep.subr.mxu1 %v46_v47  ;;  %278 = vmatpush2.msra.mxu0 %v99_v48 }
  0x3b   :  { %384 = vmatpush1.msra.mxu1 %v45_v49  ;;  %279 = vmatprep.subr.mxu0 %v96_v50 }
  0x3c   :  { %385 = vmatprep.subr.mxu1 %v42_v51  ;;  %280 = vmatpush2.msra.mxu0 %v95_v52 }
  0x3d   :  { %386 = vmatpush1.msra.mxu1 %v41_v53  ;;  %281 = vmatprep.subr.mxu0 %v92_v54 }
  0x3e   :  { %387 = vmatprep.subr.mxu1 %v38_v55  ;;  %282 = vmatpush2.msra.mxu0 %v91_v56 }
  0x3f   :  { %388 = vmatpush1.msra.mxu1 %v37_v57  ;;  %283 = vmatprep.subr.mxu0 %v88_v58 }
  0x40   :  { %389 = vmatprep.subr.mxu1 %v34_v59  ;;  %284 = vmatpush2.msra.mxu0 %v87_v60 }
  0x41   :  { %390 = vmatpush1.msra.mxu1 %v33_v61  ;;  %285 = vmatprep.subr.mxu0 %v84_v62 }
  0x42   :  { %391 = vmatprep.subr.mxu1 %v30_v63  ;;  %286 = vmatpush2.msra.mxu0 %v83_v0 }
  0x43   :  { %287 = vmatprep.mubr.f32.mxu0 %v1113_v1  ;;  %392 = vmatpush1.msra.mxu1 %v29_v2 }
  0x44   :  { %288 = vmatmul.mubr.f32.vlgmr.msra.gmra.mxu0 %v1121_v3  ;;  %393 = vmatprep.subr.mxu1 %v26_v4 }
  0x45   :  { %436 = vmatprep.subr.mxu0 %v210_v5  ;;  %394 = vmatpush1.msra.mxu1 %v25_v6 }
  0x46   :  { %437 = vmatpush1.msra.mxu0 %v209_v7 }
  0x47   :  { %8 = vsyncpa [#allocation3], 0  ;;  %395 = vmatprep.subr.mxu1 %v22_v9  ;;  %438 = vmatprep.subr.mxu0 %v206_v11  ;;  %v145_v16 = vld [vmem:[%s1446_s1 + $0x3f0] sm:$0xff]  ;;  %v142_v18 = vld [vmem:[%s1446_s1 + $0x3d8] sm:$0xff] }
  0x48   :  { %v201_v17 = vld [vmem:[%s1446_s1 + $0x5b0] sm:$0xff]  ;;  %396 = vmatpush1.msra.mxu1 %v21_v12  ;;  %439 = vmatpush1.msra.mxu0 %v205_v13  ;;  %v198_v19 = vld [vmem:[%s1446_s1 + $0x598] sm:$0xff] }
  0x49   :  { %397 = vmatprep.subr.mxu1 %v146_v14  ;;  %440 = vmatprep.subr.mxu0 %v202_v15  ;;  %v141_v20 = vld [vmem:[%s1446_s1 + $0x3d0] sm:$0xff]  ;;  %v138_v22 = vld [vmem:[%s1446_s1 + $0x3b8] sm:$0xff] }
  0x4a   :  { %v197_v21 = vld [vmem:[%s1446_s1 + $0x590] sm:$0xff]  ;;  %398 = vmatpush2.msra.mxu1 %v145_v16  ;;  %441 = vmatpush1.msra.mxu0 %v201_v17  ;;  %v194_v23 = vld [vmem:[%s1446_s1 + $0x578] sm:$0xff] }
  0x4b   :  { %399 = vmatprep.subr.mxu1 %v142_v18  ;;  %442 = vmatprep.subr.mxu0 %v198_v19  ;;  %v137_v24 = vld [vmem:[%s1446_s1 + $0x3b0] sm:$0xff]  ;;  %v134_v26 = vld [vmem:[%s1446_s1 + $0x398] sm:$0xff] }
  0x4c   :  { %v193_v25 = vld [vmem:[%s1446_s1 + $0x570] sm:$0xff]  ;;  %400 = vmatpush2.msra.mxu1 %v141_v20  ;;  %443 = vmatpush1.msra.mxu0 %v197_v21  ;;  %v190_v27 = vld [vmem:[%s1446_s1 + $0x558] sm:$0xff]  ;;  %v541_v20 = vld [vmem:[%s1447_s2 + $0xe0] sm:$0xff] }
  0x4d   :  { %401 = vmatprep.subr.mxu1 %v138_v22  ;;  %444 = vmatprep.subr.mxu0 %v194_v23  ;;  %v133_v28 = vld [vmem:[%s1446_s1 + $0x390] sm:$0xff]  ;;  %v130_v30 = vld [vmem:[%s1446_s1 + $0x378] sm:$0xff]  ;;  %v525_v21 = vld [vmem:[%s1447_s2 + $0x60] sm:$0xff] }
  0x4e   :  { %v189_v29 = vld [vmem:[%s1446_s1 + $0x550] sm:$0xff]  ;;  %402 = vmatpush2.msra.mxu1 %v137_v24  ;;  %445 = vmatpush1.msra.mxu0 %v193_v25  ;;  %v186_v31 = vld [vmem:[%s1446_s1 + $0x538] sm:$0xff] }
  0x4f   :  { %403 = vmatprep.subr.mxu1 %v134_v26  ;;  %446 = vmatprep.subr.mxu0 %v190_v27  ;;  %v129_v32 = vld [vmem:[%s1446_s1 + $0x370] sm:$0xff]  ;;  %v126_v34 = vld [vmem:[%s1446_s1 + $0x358] sm:$0xff]  ;;  %v538_v26 = vld [vmem:[%s1447_s2 + $0xc8] sm:$0xff] }
  0x50   :  { %v185_v33 = vld [vmem:[%s1446_s1 + $0x530] sm:$0xff]  ;;  %404 = vmatpush2.msra.mxu1 %v133_v28  ;;  %447 = vmatpush1.msra.mxu0 %v189_v29  ;;  %v182_v35 = vld [vmem:[%s1446_s1 + $0x518] sm:$0xff]  ;;  %v522_v27 = vld [vmem:[%s1447_s2 + $0x48] sm:$0xff] }
  0x51   :  { %405 = vmatprep.subr.mxu1 %v130_v30  ;;  %448 = vmatprep.subr.mxu0 %v186_v31  ;;  %v125_v36 = vld [vmem:[%s1446_s1 + $0x350] sm:$0xff]  ;;  %v122_v38 = vld [vmem:[%s1446_s1 + $0x338] sm:$0xff]  ;;  %v537_v28 = vld [vmem:[%s1447_s2 + $0xc0] sm:$0xff] }
  0x52   :  { %v181_v37 = vld [vmem:[%s1446_s1 + $0x510] sm:$0xff]  ;;  %406 = vmatpush2.msra.mxu1 %v129_v32  ;;  %449 = vmatpush1.msra.mxu0 %v185_v33  ;;  %v178_v39 = vld [vmem:[%s1446_s1 + $0x4f8] sm:$0xff]  ;;  %v521_v29 = vld [vmem:[%s1447_s2 + $0x40] sm:$0xff] }
  0x53   :  { %407 = vmatprep.subr.mxu1 %v126_v34  ;;  %450 = vmatprep.subr.mxu0 %v182_v35  ;;  %v121_v40 = vld [vmem:[%s1446_s1 + $0x330] sm:$0xff]  ;;  %v118_v42 = vld [vmem:[%s1446_s1 + $0x318] sm:$0xff]  ;;  %v534_v34 = vld [vmem:[%s1447_s2 + $0xa8] sm:$0xff] }
  0x54   :  { %v177_v41 = vld [vmem:[%s1446_s1 + $0x4f0] sm:$0xff]  ;;  %408 = vmatpush2.msra.mxu1 %v125_v36  ;;  %451 = vmatpush1.msra.mxu0 %v181_v37  ;;  %v174_v43 = vld [vmem:[%s1446_s1 + $0x4d8] sm:$0xff]  ;;  %v518_v35 = vld [vmem:[%s1447_s2 + $0x28] sm:$0xff] }
  0x55   :  { %409 = vmatprep.subr.mxu1 %v122_v38  ;;  %452 = vmatprep.subr.mxu0 %v178_v39  ;;  %v117_v44 = vld [vmem:[%s1446_s1 + $0x310] sm:$0xff]  ;;  %v114_v46 = vld [vmem:[%s1446_s1 + $0x2f8] sm:$0xff]  ;;  %v533_v36 = vld [vmem:[%s1447_s2 + $0xa0] sm:$0xff] }
  0x56   :  { %v173_v45 = vld [vmem:[%s1446_s1 + $0x4d0] sm:$0xff]  ;;  %410 = vmatpush2.msra.mxu1 %v121_v40  ;;  %453 = vmatpush1.msra.mxu0 %v177_v41  ;;  %v170_v47 = vld [vmem:[%s1446_s1 + $0x4b8] sm:$0xff]  ;;  %v517_v37 = vld [vmem:[%s1447_s2 + $0x20] sm:$0xff] }
  0x57   :  { %411 = vmatprep.subr.mxu1 %v118_v42  ;;  %454 = vmatprep.subr.mxu0 %v174_v43  ;;  %v113_v48 = vld [vmem:[%s1446_s1 + $0x2f0] sm:$0xff]  ;;  %v110_v50 = vld [vmem:[%s1446_s1 + $0x2d8] sm:$0xff]  ;;  %v530_v42 = vld [vmem:[%s1447_s2 + $0x88] sm:$0xff] }
  0x58   :  { %v169_v49 = vld [vmem:[%s1446_s1 + $0x4b0] sm:$0xff]  ;;  %412 = vmatpush2.msra.mxu1 %v117_v44  ;;  %455 = vmatpush1.msra.mxu0 %v173_v45  ;;  %v166_v51 = vld [vmem:[%s1446_s1 + $0x498] sm:$0xff]  ;;  %v514_v43 = vld [vmem:[%s1447_s2 + $0x8] sm:$0xff] }
  0x59   :  { %413 = vmatprep.subr.mxu1 %v114_v46  ;;  %456 = vmatprep.subr.mxu0 %v170_v47  ;;  %v109_v52 = vld [vmem:[%s1446_s1 + $0x2d0] sm:$0xff]  ;;  %v106_v54 = vld [vmem:[%s1446_s1 + $0x2b8] sm:$0xff]  ;;  %v529_v44 = vld [vmem:[%s1447_s2 + $0x80] sm:$0xff] }
  0x5a   :  { %v165_v53 = vld [vmem:[%s1446_s1 + $0x490] sm:$0xff]  ;;  %414 = vmatpush2.msra.mxu1 %v113_v48  ;;  %457 = vmatpush1.msra.mxu0 %v169_v49  ;;  %v162_v55 = vld [vmem:[%s1446_s1 + $0x478] sm:$0xff]  ;;  %v513_v45 = vld [vmem:[%s1447_s2] sm:$0xff] }
  0x5b   :  { %415 = vmatprep.subr.mxu1 %v110_v50  ;;  %458 = vmatprep.subr.mxu0 %v166_v51  ;;  %v105_v56 = vld [vmem:[%s1446_s1 + $0x2b0] sm:$0xff]  ;;  %v102_v58 = vld [vmem:[%s1446_s1 + $0x298] sm:$0xff] }
  0x5c   :  { %v161_v57 = vld [vmem:[%s1446_s1 + $0x470] sm:$0xff]  ;;  %416 = vmatpush2.msra.mxu1 %v109_v52  ;;  %459 = vmatpush1.msra.mxu0 %v165_v53  ;;  %v158_v59 = vld [vmem:[%s1446_s1 + $0x458] sm:$0xff] }
  0x5d   :  { %417 = vmatprep.subr.mxu1 %v106_v54  ;;  %460 = vmatprep.subr.mxu0 %v162_v55  ;;  %v101_v60 = vld [vmem:[%s1446_s1 + $0x290] sm:$0xff]  ;;  %v98_v62 = vld [vmem:[%s1446_s1 + $0x278] sm:$0xff] }
  0x5e   :  { %v157_v61 = vld [vmem:[%s1446_s1 + $0x450] sm:$0xff]  ;;  %418 = vmatpush2.msra.mxu1 %v105_v56  ;;  %461 = vmatpush1.msra.mxu0 %v161_v57  ;;  %v154_v63 = vld [vmem:[%s1446_s1 + $0x438] sm:$0xff] }
  0x5f   :  { %419 = vmatprep.subr.mxu1 %v102_v58  ;;  %462 = vmatprep.subr.mxu0 %v158_v59  ;;  %v97_v0 = vld [vmem:[%s1446_s1 + $0x270] sm:$0xff]  ;;  %v94_v4 = vld [vmem:[%s1446_s1 + $0x258] sm:$0xff] }
  0x60   :  { %v153_v2 = vld [vmem:[%s1446_s1 + $0x430] sm:$0xff]  ;;  %420 = vmatpush2.msra.mxu1 %v101_v60  ;;  %463 = vmatpush1.msra.mxu0 %v157_v61  ;;  %v150_v5 = vld [vmem:[%s1446_s1 + $0x418] sm:$0xff] }
  0x61   :  { %421 = vmatprep.subr.mxu1 %v98_v62  ;;  %464 = vmatprep.subr.mxu0 %v154_v63  ;;  %v93_v6 = vld [vmem:[%s1446_s1 + $0x250] sm:$0xff]  ;;  %v90_v9 = vld [vmem:[%s1446_s1 + $0x238] sm:$0xff] }
  0x62   :  { %v149_v7 = vld [vmem:[%s1446_s1 + $0x410] sm:$0xff]  ;;  %422 = vmatpush2.msra.mxu1 %v97_v0  ;;  %465 = vmatpush1.msra.mxu0 %v153_v2  ;;  %v218_v11 = vld [vmem:[%s1446_s1 + $0x638] sm:$0xff] }
  0x63   :  { %423 = vmatprep.subr.mxu1 %v94_v4  ;;  %466 = vmatprep.subr.mxu0 %v150_v5  ;;  %v89_v12 = vld [vmem:[%s1446_s1 + $0x230] sm:$0xff]  ;;  %v86_v14 = vld [vmem:[%s1446_s1 + $0x218] sm:$0xff] }
  0x64   :  { %v217_v13 = vld [vmem:[%s1446_s1 + $0x630] sm:$0xff]  ;;  %424 = vmatpush2.msra.mxu1 %v93_v6  ;;  %467 = vmatpush1.msra.mxu0 %v149_v7  ;;  %v214_v15 = vld [vmem:[%s1446_s1 + $0x618] sm:$0xff] }
  0x65   :  { %425 = vmatprep.subr.mxu1 %v90_v9  ;;  %496 = vmatprep.subr.mxu0 %v218_v11  ;;  %v85_v16 = vld [vmem:[%s1446_s1 + $0x210] sm:$0xff]  ;;  %v544_v18 = vld [vmem:[%s1447_s2 + $0xf8] sm:$0xff] }
  0x66   :  { %426 = vmatpush2.msra.mxu1 %v89_v12  ;;  %497 = vmatpush2.msra.mxu0 %v217_v13  ;;  %v213_v17 = vld [vmem:[%s1446_s1 + $0x610] sm:$0xff]  ;;  %v528_v19 = vld [vmem:[%s1447_s2 + $0x78] sm:$0xff] }
  0x67   :  { %427 = vmatprep.subr.mxu1 %v86_v14  ;;  %498 = vmatprep.subr.mxu0 %v214_v15  ;;  %v540_v22 = vld [vmem:[%s1447_s2 + $0xd8] sm:$0xff]  ;;  %v539_v24 = vld [vmem:[%s1447_s2 + $0xd0] sm:$0xff] }
  0x68   :  { %428 = vmatpush2.msra.mxu1 %v85_v16  ;;  %429 = vmatprep.mubr.f32.mxu1 %v1113_v1  ;;  %v543_v1 = vld [vmem:[%s1447_s2 + $0xf0] sm:$0xff]  ;;  %v524_v23 = vld [vmem:[%s1447_s2 + $0x58] sm:$0xff] }
  0x69   :  { %499 = vmatpush2.msra.mxu0 %v213_v17  ;;  %634 = vmatprep.mubr.msk.f32.mxu0 %vm219_vm0, %v935_v8  ;;  %v527_v8 = vld [vmem:[%s1447_s2 + $0x70] sm:$0xff]  ;;  %v536_v30 = vld [vmem:[%s1447_s2 + $0xb8] sm:$0xff] }
  0x6a   :  { %430 = vmatmul.mubr.f32.vlgmr.msra.gmra.mxu1 %v1121_v3  ;;  %501 = vmatmul.mubr.f32.vlgmr.msra.gmra.mxu0 %v943_v10  ;;  %v542_v10 = vld [vmem:[%s1447_s2 + $0xe8] sm:$0xff]  ;;  %v523_v25 = vld [vmem:[%s1447_s2 + $0x50] sm:$0xff]  ;;  %v520_v31 = vld [vmem:[%s1447_s2 + $0x38] sm:$0xff] }
  0x6b   :  { %635 = vmatprep.subr.mxu0 %v544_v18  ;;  %v526_v3 = vld [vmem:[%s1447_s2 + $0x68] sm:$0xff]  ;;  %v535_v32 = vld [vmem:[%s1447_s2 + $0xb0] sm:$0xff]  ;;  %v532_v38 = vld [vmem:[%s1447_s2 + $0x98] sm:$0xff] }
  0x6c   :  { %636 = vmatpush3.msra.mxu0 %v528_v19  ;;  %v519_v33 = vld [vmem:[%s1447_s2 + $0x30] sm:$0xff]  ;;  %v516_v39 = vld [vmem:[%s1447_s2 + $0x18] sm:$0xff] }
  0x6d   :  { %637 = vmatprep.subr.mxu0 %v543_v1  ;;  %v531_v40 = vld [vmem:[%s1447_s2 + $0x90] sm:$0xff] }
  0x6e   :  { %638 = vmatpush3.msra.mxu0 %v527_v8  ;;  %v515_v41 = vld [vmem:[%s1447_s2 + $0x10] sm:$0xff]  ;;  %s695_s2 = smov [#allocation2]  }
  0x6f   :  { %639 = vmatprep.subr.mxu0 %v542_v10  ;;  %s625_s14 = sshll.u32 %s695_s2, 4  ;;  %s626_s14 = int_to_ptr.vmem [resolvable:$true] %s625_s14 }
  0x70   :  { %640 = vmatpush3.msra.mxu0 %v526_v3  ;;  %s673_s15 = scalar_lea.vmem %s626_s14, 128  ;;  %p678_p1 = scmp.lt.s32.totalorder %s626_s14, %s626_s14 }
  0x71   :  { %641 = vmatprep.subr.mxu0 %v541_v20  ;;  %p674_p0 = scmp.ne.s32.totalorder %s626_s14, %s673_s15  ;;  %p679_p2 = scmp.lt.s32.totalorder %s673_s15, %s673_s15 }
  0x72   :  { %642 = vmatpush3.msra.mxu0 %v525_v21 }
  0x73   :  { %643 = vmatprep.subr.mxu0 %v540_v22  ;;  %p680_p3 = por %p679_p2, %p678_p1 }
  0x74   :  { %644 = vmatpush3.msra.mxu0 %v524_v23 }
  0x75   :  { %645 = vmatprep.subr.mxu0 %v539_v24  ;;  %p681_p4 = pnand %p680_p3, %p674_p0 }
  0x76   :  { %646 = vmatpush3.msra.mxu0 %v523_v25 }
  0x77   :  { %647 = vmatprep.subr.mxu0 %v538_v26 }
  0x78   :  { %648 = vmatpush3.msra.mxu0 %v522_v27 }
  0x79   :  { %649 = vmatprep.subr.mxu0 %v537_v28 }
  0x7a   :  { %650 = vmatpush3.msra.mxu0 %v521_v29 }
  0x7b   :  { %651 = vmatprep.subr.mxu0 %v536_v30 }
  0x7c   :  { %652 = vmatpush3.msra.mxu0 %v520_v31 }
  0x7d   :  { %653 = vmatprep.subr.mxu0 %v535_v32 }
  0x7e   :  { %654 = vmatpush3.msra.mxu0 %v519_v33 }
  0x7f   :  { %655 = vmatprep.subr.mxu0 %v534_v34 }
  0x80   :  { %656 = vmatpush3.msra.mxu0 %v518_v35 }
  0x81   :  { %657 = vmatprep.subr.mxu0 %v533_v36 }
  0x82   :  { %658 = vmatpush3.msra.mxu0 %v517_v37 }
  0x83   :  { %659 = vmatprep.subr.mxu0 %v532_v38 }
  0x84   :  { %660 = vmatpush3.msra.mxu0 %v516_v39 }
  0x85   :  { %661 = vmatprep.subr.mxu0 %v531_v40 }
  0x86   :  { %662 = vmatpush3.msra.mxu0 %v515_v41 }
  0x87   :  { %663 = vmatprep.subr.mxu0 %v530_v42 }
  0x88   :  { %664 = vmatpush3.msra.mxu0 %v514_v43 }
  0x89   :  { %665 = vmatprep.subr.mxu0 %v529_v44 }
  0x8a   :  { %666 = vmatpush3.msra.mxu0 %v513_v45 }
  0xe7   :  { %v360_v46 = vpop.f32.mrf.mxu1 }
  0xe9   :  { %v362_v48 = vpop.f32.mrf.mxu1 }
 0x104   :  { %v289_v47 = vpop.f32.mrf.mxu0 }
 0x105   :  { %v361_v54 = vadd.f32 %v360_v46, %v289_v47 }
 0x106   :  { %v291_v49 = vpop.f32.mrf.mxu0 }
 0x107   :  { %v363_v52 = vadd.f32 %v362_v48, %v291_v49  ;;  %v507_v61 = vmul.f32 %v361_v54, %v361_v54 }
 0x109   :  { %v508_v59 = vmul.f32 %v363_v52, %v363_v52 }
 0x12a   :  { %v431_v50 = vpop.f32.mrf.mxu1  ;;  %v502_v51 = vpop.f32.mrf.mxu0 }
 0x12b   :  { %v503_v53 = vadd.f32 %v502_v51, %v431_v50 }
 0x12c   :  { %v433_v55 = vpop.f32.mrf.mxu1  ;;  %v504_v56 = vpop.f32.mrf.mxu0 }
 0x12d   :  { %v505_v57 = vadd.f32 %v504_v56, %v433_v55  ;;  %v509_v58 = vmul.f32 %v503_v53, %v503_v53 }
 0x12f   :  { %v510_v60 = vmul.f32 %v505_v57, %v505_v57  ;;  %v511_v63 = vadd.f32 %v509_v58, %v507_v61 }
 0x131   :  { %v512_v62 = vadd.f32 %v510_v60, %v508_v59 }
 0x133   :  { %609 = vmatprep.mubr.f32.mxu0 %v512_v62 }
 0x134   :  { %610 = vmatmul.mubr.f32.vlgmr.msra.gmra.mxu0 %v511_v63 }
 0x1f4   :  { %v667_v0 = vpop.f32.mrf.mxu0 }
 0x1f6   :  { %v668_v2 = vpop.f32.mrf.mxu0 }
 0x1f7   :  { %v669_v4 = vadd.f32 %v668_v2, %v667_v0 }
 0x1f9   :  { %v615_v5 = vmax.f32 %v669_v4, 1.1920929e-07 }
 0x1fb   :  { %671 = vlog2.f32 %v615_v5 }
 0x208   :  { %v672_v6 = vpop.eup %671 }
 0x209   :  { %v617_v7 = vmul.f32 0.6931472, %v672_v6 }
 0x20b   :  { %618 = vst [vmem:[#allocation2] sm:$0xff] %v617_v7 }
 0x20c   :  { %684 = shalt.err (!%p681_p4)
}
 0x20d   :  { %628 = dma.vmem_to_hbm [thread:$0]  %s626_s14, 128, %s1448_s3, [#allocation3]  }
 0x20e   :  { %693 = dma.done.wait [#allocation3], 128  }
 0x20f   :  { %694 = vsyncadd [#allocation3], 4294967168 }
 0x210   :  { %632 = vsyncpa [#allocation3], 1 }

</bundles_post_ra>
